<compile_context>
chip_gen: v6e
topology: v6e:2x2x1
jax: 0.10.0
libtpu: 0.0.40
codegen_flags: <defaults>
</compile_context>

<pallas_src>
import functools

import jax
import jax.numpy as jnp
from jax.experimental import pallas as pl
from jax.experimental.pallas import tpu as pltpu


def _sampled_xent_kernel(logit_ref, out_ref, *, tile_rows, n_valid_rows, mask_rows):
    """One (TILE_R, B) row tile -> per-row (lse - diag) written to (TILE_R, 1)."""
    i = pl.program_id(0)

    # Upcast inside the kernel (HBM traffic stays at the input dtype width).
    x = logit_ref[...].astype(jnp.float32)                               # (TILE_R, B)

    # Numerically stable log-sum-exp per row.
    m = jnp.max(x, axis=-1, keepdims=True)                               # (TILE_R, 1)
    lse = jnp.log(jnp.sum(jnp.exp(x - m), axis=-1, keepdims=True)) + m   # (TILE_R, 1)

    # Diagonal (target = arange(B)): global row index == column index.
    # One full-tile lane iota + a cheap (TILE_R, 1) sublane iota (vreg friendly).
    row_global = (jax.lax.broadcasted_iota(jnp.int32, (tile_rows, 1), 0)
                  + i * tile_rows)                                       # (TILE_R, 1)
    col_ids = jax.lax.broadcasted_iota(jnp.int32, x.shape, 1)            # (TILE_R, B)
    diag = jnp.sum(jnp.where(col_ids == row_global, x, 0.0),
                   axis=-1, keepdims=True)                               # (TILE_R, 1)

    per_row = lse - diag
    if mask_rows:
        # Zero-padded rows (added by the wrapper) must not contribute.
        per_row = jnp.where(row_global < n_valid_rows, per_row, 0.0)

    out_ref[...] = per_row


def _choose_tile_rows(n_rows, n_cols):
    """Row-tile height: ~4 MiB of f32 per tile, multiple of 8 (f32 sublane)."""
    if n_rows <= 8:
        return n_rows                                  # full-dim block, always legal
    rows8 = ((n_rows + 7) // 8) * 8                    # rows after sublane padding
    budget_elems = (4 * 1024 * 1024) // 4              # ~4 MiB f32 working tile
    t = (budget_elems // max(n_cols, 1)) // 8 * 8
    t = max(8, min(1024, t))
    return min(t, rows8)


def sampled_cross_entropy_loss(logit, *, tile_rows=None):
    """Pallas implementation of SampledCrossEntropyLoss.forward."""
    assert logit.ndim == 2 and logit.shape[0] == logit.shape[1], (
        "logit must be square (B, B): target = arange(logit.size(1)) must "
        "match the batch dimension for nn.CrossEntropyLoss.")
    n_rows, n_cols = logit.shape
    itemsize = jnp.dtype(logit.dtype).itemsize

    if tile_rows is None:
        tile_rows = _choose_tile_rows(n_rows, n_cols)
    num_tiles = pl.cdiv(n_rows, tile_rows)
    rows_pad = num_tiles * tile_rows
    if rows_pad != n_rows:
        # Zero row-padding is safe: padded rows are masked to 0 in the kernel.
        logit = jnp.pad(logit, ((0, rows_pad - n_rows), (0, 0)))

    kernel = functools.partial(
        _sampled_xent_kernel,
        tile_rows=tile_rows,
        n_valid_rows=n_rows,
        mask_rows=(rows_pad != n_rows),
    )

    # Explicit VMEM budget: 2x double-buffered input tiles + f32 intermediates
    # headroom + the tiny output; clamped to stay safe on v5e/v6e/v7x.
    vmem_limit = int(min(max(2 * tile_rows * n_cols * itemsize
                             + 4 * tile_rows * n_cols * 4
                             + 4 * rows_pad * 4
                             + (1 << 20),
                             16 << 20),
                         32 << 20))

    cost = pl.CostEstimate(
        flops=int(5 * n_rows * n_cols),
        transcendentals=int(n_rows * n_cols),
        bytes_accessed=int(n_rows * n_cols * itemsize + rows_pad * 4),
    )

    per_row = pl.pallas_call(
        kernel,
        out_shape=jax.ShapeDtypeStruct((rows_pad, 1), jnp.float32),
        grid_spec=pltpu.PrefetchScalarGridSpec(
            num_scalar_prefetch=0,
            grid=(num_tiles,),
            in_specs=[pl.BlockSpec((tile_rows, n_cols), lambda i: (i, 0))],
            out_specs=pl.BlockSpec((tile_rows, 1), lambda i: (i, 0)),
        ),
        compiler_params=pltpu.CompilerParams(
            dimension_semantics=("parallel",),   # v7x: shard row tiles across 2 TCs
            vmem_limit_bytes=vmem_limit,
        ),
        cost_estimate=cost,
    )(logit)

    # Tiny final reduction in plain JAX (padded rows contribute exactly 0).
    return jnp.sum(per_row) / n_rows


def _reference_loss(logit):
    # Pure-JAX reference for sanity checking.
    x = logit.astype(jnp.float32)
    lse = jax.nn.logsumexp(x, axis=-1)
    diag = jnp.diagonal(x)
    return jnp.mean(lse - diag)


if __name__ == "__main__":
    root = jax.random.PRNGKey(0)
    k1, k2, k3 = jax.random.split(root, 3)

    # Case 1: small square logits (single tile), f32.
    B = 8
    logit = jax.random.normal(k1, (B, B), dtype=jnp.float32)
    loss = jax.block_until_ready(sampled_cross_entropy_loss(logit))
    ref = jax.block_until_ready(_reference_loss(logit))
    assert jnp.allclose(loss, ref, atol=1e-5, rtol=1e-5), (loss, ref)

    # Case 2: multi-tile grid + padded/masked rows (force TILE_R=8 over B=20 -> 3 tiles).
    B2 = 20
    logit2 = jax.random.normal(k2, (B2, B2), dtype=jnp.float32)
    loss2 = jax.block_until_ready(sampled_cross_entropy_loss(logit2, tile_rows=8))
    ref2 = jax.block_until_ready(_reference_loss(logit2))
    assert jnp.allclose(loss2, ref2, atol=1e-5, rtol=1e-5), (loss2, ref2)

    # Case 3: bf16 input (upcast happens inside the kernel).
    logit3 = jax.random.normal(k3, (B, B), dtype=jnp.float32).astype(jnp.bfloat16)
    loss3 = jax.block_until_ready(sampled_cross_entropy_loss(logit3))
    ref3 = jax.block_until_ready(_reference_loss(logit3))
    assert jnp.allclose(loss3, ref3, atol=1e-4, rtol=1e-4), (loss3, ref3)

    print("KERNEL_OK")
</pallas_src>

<mosaic_0001>
module attributes {stable_mosaic.version = 11 : i64} {
  func.func @_sampled_xent_kernel(%arg0: i32, %arg1: memref<8x8xf32, #tpu.memory_space<vmem>>, %arg2: memref<8x1xf32, #tpu.memory_space<vmem>>) attributes {dimension_semantics = [#tpu.dimension_semantics<parallel>], iteration_bounds = array<i64: 1>, scalar_prefetch = 0 : i64, scratch_operands = 0 : i64, tpu.core_type = #tpu.core_type<tc>, window_params = [{transform_indices = @transform_0, window_bounds = array<i64: 8, 8>}, {transform_indices = @transform_1, window_bounds = array<i64: 8, 1>}]} {
    %c0 = arith.constant 0 : index
    %c0_0 = arith.constant 0 : index
    %0 = vector.load %arg1[%c0, %c0_0] : memref<8x8xf32, #tpu.memory_space<vmem>>, vector<8x8xf32>
    %cst = arith.constant dense<0xFF800000> : vector<8xf32>
    %1 = vector.multi_reduction <maximumf>, %0, %cst [1] : vector<8x8xf32> to vector<8xf32>
    %2 = vector.shape_cast %1 : vector<8xf32> to vector<8x1xf32>
    %3 = vector.broadcast %2 : vector<8x1xf32> to vector<8x8xf32>
    %4 = arith.subf %0, %3 : vector<8x8xf32>
    %5 = math.exp %4 : vector<8x8xf32>
    %cst_1 = arith.constant dense<0.000000e+00> : vector<8xf32>
    %6 = vector.multi_reduction <add>, %5, %cst_1 [1] : vector<8x8xf32> to vector<8xf32>
    %7 = vector.shape_cast %6 : vector<8xf32> to vector<8x1xf32>
    %8 = math.log %7 : vector<8x1xf32>
    %9 = arith.addf %8, %2 : vector<8x1xf32>
    %10 = tpu.iota {dimensions = array<i32: 0>} : vector<8x1xi32>
    %c8_i32 = arith.constant 8 : i32
    %11 = arith.muli %arg0, %c8_i32 : i32
    %12 = vector.broadcast %11 : i32 to vector<8x1xi32>
    %13 = arith.addi %10, %12 : vector<8x1xi32>
    %14 = tpu.iota {dimensions = array<i32: 1>} : vector<8x8xi32>
    %15 = vector.broadcast %13 : vector<8x1xi32> to vector<8x8xi32>
    %16 = arith.cmpi eq, %14, %15 : vector<8x8xi32>
    %cst_2 = arith.constant 0.000000e+00 : f32
    %17 = vector.broadcast %cst_2 : f32 to vector<8x8xf32>
    %18 = arith.select %16, %0, %17 : vector<8x8xi1>, vector<8x8xf32>
    %cst_3 = arith.constant dense<0.000000e+00> : vector<8xf32>
    %19 = vector.multi_reduction <add>, %18, %cst_3 [1] : vector<8x8xf32> to vector<8xf32>
    %20 = vector.shape_cast %19 : vector<8xf32> to vector<8x1xf32>
    %21 = arith.subf %9, %20 : vector<8x1xf32>
    %c0_4 = arith.constant 0 : index
    %c0_5 = arith.constant 0 : index
    %22 = vector.load %arg2[%c0_4, %c0_5] : memref<8x1xf32, #tpu.memory_space<vmem>>, vector<8x1xf32>
    tpu.vector_store %arg2[%c0_4, %c0_5], %21 {strides = array<i32>} : memref<8x1xf32, #tpu.memory_space<vmem>>, vector<8x1xf32>,
    return
  }
  func.func @transform_0(%arg0: i32) -> (i32, i32) {
    %c0_i32 = arith.constant 0 : i32
    %c0_i32_0 = arith.constant 0 : i32
    return %arg0, %c0_i32 : i32, i32
  }
  func.func @transform_1(%arg0: i32) -> (i32, i32) {
    %c0_i32 = arith.constant 0 : i32
    %c0_i32_0 = arith.constant 0 : i32
    return %arg0, %c0_i32 : i32, i32
  }
}

</mosaic_0001>

<bundles_post_ra>
// kernel: tpu_custom_call.1
= control target key start
LH: loop header
LB: loop body
LE: loop exit
PB: predicated region body
PF: predicated region fallthrough
CT: control target
= control target key end

     0   :  { %6 = vsyncpa [#allocation3], 0  ;;  %s81_s6 = smov [#allocation2]   ;;  %s101_s0 = inlined_call_operand.hbm [shape: f32[8,8], index: 0, kind: input, shape index: {}]   ;;  %s102_s1 = inlined_call_operand.vmem [shape: f32[8,1], index: 1, kind: output, shape index: {}]  }
   0x1   :  { %s13_s7 = sshll.u32 %s81_s6, 4  ;;  %s14_s7 = int_to_ptr.vmem [resolvable:$true] %s13_s7 }
   0x2   :  { %s67_s8 = scalar_lea.vmem %s14_s7, 128  ;;  %p72_p1 = scmp.lt.s32.totalorder %s14_s7, %s14_s7 }
   0x3   :  { %p68_p0 = scmp.ne.s32.totalorder %s14_s7, %s67_s8  ;;  %p73_p2 = scmp.lt.s32.totalorder %s67_s8, %s67_s8 }
   0x5   :  { %p74_p3 = por %p73_p2, %p72_p1 }
   0x7   :  { %p75_p4 = pnand %p74_p3, %p68_p0 }
   0x9   :  { %78 = shalt.err (!%p75_p4)
}
   0xa   :  { %16 = dma.hbm_to_vmem [thread:$0]  %s101_s0, 128, %s14_s7, [#allocation3]  }
   0xb   :  { %79 = dma.done.wait [#allocation3], 128  }
   0xc   :  { %80 = vsyncadd [#allocation3], 4294967168  ;;  %vm21_vm0 = vcmask 64512   ;;  %v20_v0 = vld [vmem:[#allocation2] sm:$0xff]  ;;  %v34_v2 = vlaneseq  ;;  %vm47_vm2 = vcmask 7168  }
   0xd   :  { %v22_v1 = vsel %vm21_vm0, %v20_v0, -inf }
   0xe   :  { %23 = vmax.xlane.f32.xlu0 %v22_v1  ;;  %v35_v3 = vshrl.u32 %v34_v2, 7  ;;  %v40_v4 = vand.u32 127, %v34_v2 }
  0x10   :  { %vm41_vm1 = vcmp.eq.s32.totalorder %v40_v4, %v35_v3 }
  0x11   :  { %v42_v5 = vsel %vm41_vm1, %v20_v0, 0.0 }
  0x12   :  { %v43_v6 = vsel %vm21_vm0, %v42_v5, 0.0 }
  0x13   :  { %44 = vadd.xlane.f32.xlu1 %v43_v6 }
  0x97   :  { %v24_v7 = vpop.xlane.xlu0 %23 }
  0x98   :  { %v25_v8 = vsub.f32 %v20_v0, %v24_v7 }
  0x9a   :  { %v26_v9 = vmul.f32 1.442695, %v25_v8 }
  0x9c   :  { %55 = vpow2.f32 %v26_v9  ;;  %v45_v15 = vpop.xlane.xlu1 %44 }
  0xa9   :  { %v56_v10 = vpop.eup %55 }
  0xaa   :  { %v28_v11 = vsel %vm21_vm0, %v56_v10, 0.0 }
  0xab   :  { %29 = vadd.xlane.f32.xlu0 %v28_v11 }
 0x134   :  { %v30_v12 = vpop.xlane.xlu0 %29 }
 0x135   :  { %57 = vlog2.f32 %v30_v12 }
 0x142   :  { %v58_v13 = vpop.eup %57 }
 0x143   :  { %v32_v14 = vmul.f32 0.6931472, %v58_v13 }
 0x145   :  { %v33_v16 = vadd.f32 %v32_v14, %v24_v7 }
 0x147   :  { %v46_v17 = vsub.f32 %v33_v16, %v45_v15 }
 0x149   :  { %48 = vst.msk [vmem:[%s102_s1] sm:$0xff] %vm47_vm2, %v46_v17 }
 0x14a   :  { %53 = vsyncpa [#allocation3], 1 }

</bundles_post_ra>
